<compile_context>
chip_gen: v7x
topology: tpu7x:2x2x1
jax: 0.10.0
libtpu: 0.0.40
codegen_flags: <defaults>
</compile_context>

<pallas_src>
import math
import jax
import jax.numpy as jnp
from jax.experimental import pallas as pl
from jax.experimental.pallas import tpu as pltpu


def _make_kernel(sum_v, n_cat):
    def kernel(x_ref, xc_ref, pe_ref, w_ref, tab_ref, o_ref):
        # x_ref : (TM, 3*Cin) f32   pre-shifted/stacked conv input rows
        # xc_ref: (TM, n_cat) i32   categorical indices, already offset per feature
        # pe_ref: (TM, D)     f32   positional embedding + conv bias for these rows
        # w_ref : (3*Cin, D)  f32   stacked conv weights
        # tab_ref:(sum_V, sum_E) f32 block-diagonal categorical embedding table
        # o_ref : (TM, D + sum_E) f32

        # ---- TokenEmbedding (fused 3-tap circular conv) + positional + bias ----
        to = jnp.dot(x_ref[...], w_ref[...],
                     preferred_element_type=jnp.float32) + pe_ref[...]

        # ---- CatesEmbedding: fused multi-hot @ block-diagonal table ----
        xc = xc_ref[...]
        tm = xc.shape[0]
        iota = jax.lax.broadcasted_iota(jnp.int32, (tm, sum_v), 1)
        mh = (iota == xc[:, 0:1]).astype(jnp.float32)
        for i in range(1, n_cat):
            mh = mh + (iota == xc[:, i:i + 1]).astype(jnp.float32)
        cat = jnp.dot(mh, tab_ref[...], preferred_element_type=jnp.float32)

        # ---- single store of the full output row block ----
        o_ref[...] = jnp.concatenate([to, cat], axis=1)

    return kernel


def collect_embedding_forward(x_num, x_cat, conv_w, conv_b, pe, tables, *, tile_rows=1024):
    """x_num: (B, L, token_dim) f32; x_cat: (B, L, n_cat) int.
    conv_w: (3, token_dim, D) (tap-major); conv_b: (D,); pe: (max_len, D);
    tables: list of (V_i, E_i) with row 0 zeroed (padding_idx=0).
    Returns (B, L, D + sum(E_i)) f32 == torch.cat([dropout(conv(x)+pe), cat_embs], axis=2).
    Note: final_emb_dim is unused by the reference forward (no projection layer applied).
    """
    B, L, Cin = x_num.shape
    n_cat = x_cat.shape[2]
    D = conv_w.shape[2]
    embed_dims = [int(t.shape[1]) for t in tables]
    vocab_sizes = [int(t.shape[0]) for t in tables]
    sum_e, sum_v = sum(embed_dims), sum(vocab_sizes)
    out_dim = D + sum_e
    rows = B * L

    # --- wrapper-side prep (halo-free tiling) ---
    # circular conv taps: out[l] = w0*x[l-1] + w1*x[l] + w2*x[l+1]  (mod L)
    xm1 = jnp.roll(x_num, 1, axis=1)
    xp1 = jnp.roll(x_num, -1, axis=1)
    x_stacked = jnp.concatenate([xm1, x_num, xp1], axis=-1).astype(jnp.float32)
    x_stacked = x_stacked.reshape(rows, 3 * Cin)
    w2d = conv_w.reshape(3 * Cin, D).astype(jnp.float32)

    # fold conv bias into positional rows; expand to one row per (b, l)
    pe_rows = jnp.tile(pe[:L].astype(jnp.float32) + conv_b[None, :].astype(jnp.float32),
                       (B, 1))                                          # (rows, D)

    # block-diagonal categorical table + cumulative vocab offsets
    big_tab = jnp.zeros((sum_v, sum_e), jnp.float32)
    off_v = off_e = 0
    offsets = []
    for t in tables:
        V, E = t.shape
        big_tab = big_tab.at[off_v:off_v + V, off_e:off_e + E].set(t.astype(jnp.float32))
        offsets.append(off_v)
        off_v += V
        off_e += E
    xc_off = (x_cat.astype(jnp.int32)
              + jnp.asarray(offsets, jnp.int32)[None, None, :]).reshape(rows, n_cat)

    # --- row tiling: biggest block that fits comfortably in VMEM on all generations ---
    TM = rows if rows <= tile_rows else tile_rows
    grid = (pl.cdiv(rows, TM),)

    kernel = _make_kernel(sum_v, n_cat)
    out = pl.pallas_call(
        kernel,
        grid=grid,
        in_specs=[
            pl.BlockSpec((TM, 3 * Cin), lambda i: (i, 0)),   # x rows
            pl.BlockSpec((TM, n_cat), lambda i: (i, 0)),     # cat indices rows
            pl.BlockSpec((TM, D), lambda i: (i, 0)),         # pe (+bias) rows
            pl.BlockSpec((3 * Cin, D), lambda i: (0, 0)),    # conv weight (resident)
            pl.BlockSpec((sum_v, sum_e), lambda i: (0, 0)),  # cat table (resident)
        ],
        out_specs=pl.BlockSpec((TM, out_dim), lambda i: (i, 0)),
        out_shape=jax.ShapeDtypeStruct((rows, out_dim), jnp.float32),
        compiler_params=pltpu.CompilerParams(
            dimension_semantics=("parallel",),
            vmem_limit_bytes=32 * 1024 * 1024,
        ),
    )(x_stacked, xc_off, pe_rows, w2d, big_tab)
    return out.reshape(B, L, out_dim)


if __name__ == "__main__":
    key = jax.random.PRNGKey(0)
    B, L = 2, 8
    token_dim, token_emb_dim = 4, 32
    list_vocab_sizes = [7, 5, 11]
    list_embed_dims = [8, 8, 16]
    tot_cat_emb_dim = sum(list_embed_dims)
    max_len = 4330

    keys = jax.random.split(key, 5)

    # Inputs
    x_num = jax.random.normal(keys[0], (B, L, token_dim), jnp.float32)
    cats = [jax.random.randint(jax.random.fold_in(keys[1], i), (B, L), 0, V)
            for i, V in enumerate(list_vocab_sizes)]
    x_cat = jnp.stack(cats, axis=2).astype(jnp.int32)

    # Conv1d params (kaiming-normal-style init), torch layout (D, Cin, 3) -> (3, Cin, D)
    fan_in = token_dim * 3
    gain = math.sqrt(2.0 / (1.0 + 0.01 ** 2))
    w_torch = (gain / math.sqrt(fan_in)) * jax.random.normal(
        keys[2], (token_emb_dim, token_dim, 3), jnp.float32)
    conv_w = jnp.transpose(w_torch, (2, 1, 0))
    bound = 1.0 / math.sqrt(fan_in)
    conv_b = jax.random.uniform(keys[3], (token_emb_dim,), jnp.float32, -bound, bound)

    # Positional embedding table (sin/cos)
    position = jnp.arange(max_len, dtype=jnp.float32)[:, None]
    div_term = jnp.exp(jnp.arange(0, token_emb_dim, 2, dtype=jnp.float32)
                       * (-math.log(10000.0) / token_emb_dim))
    pe = jnp.zeros((max_len, token_emb_dim), jnp.float32)
    pe = pe.at[:, 0::2].set(jnp.sin(position * div_term))
    pe = pe.at[:, 1::2].set(jnp.cos(position * div_term))

    # Categorical embedding tables (padding_idx=0 -> row 0 is zeros)
    tables = []
    for i, (V, E) in enumerate(zip(list_vocab_sizes, list_embed_dims)):
        t = jax.random.normal(jax.random.fold_in(keys[4], i), (V, E), jnp.float32)
        tables.append(t.at[0].set(0.0))

    out = jax.block_until_ready(
        collect_embedding_forward(x_num, x_cat, conv_w, conv_b, pe, tables))

    # Pure-JAX reference (sanity check)
    xm1 = jnp.roll(x_num, 1, axis=1)
    xp1 = jnp.roll(x_num, -1, axis=1)
    to_ref = (jnp.einsum("blc,cd->bld", xm1, conv_w[0])
              + jnp.einsum("blc,cd->bld", x_num, conv_w[1])
              + jnp.einsum("blc,cd->bld", xp1, conv_w[2])
              + conv_b[None, None, :]) + pe[:L][None]
    cat_ref = jnp.concatenate([tables[i][x_cat[:, :, i]] for i in range(len(tables))], axis=2)
    o_ref = jnp.concatenate([to_ref, cat_ref], axis=2)

    assert out.shape == (B, L, token_emb_dim + tot_cat_emb_dim)
    assert jnp.allclose(out, o_ref, rtol=2e-2, atol=2e-2)
    print("KERNEL_OK")
</pallas_src>

<mosaic_0001>
module attributes {stable_mosaic.version = 11 : i64} {
  func.func @kernel(%arg0: i32, %arg1: memref<16x12xf32, #tpu.memory_space<vmem>>, %arg2: memref<16x3xi32, #tpu.memory_space<vmem>>, %arg3: memref<16x32xf32, #tpu.memory_space<vmem>>, %arg4: memref<12x32xf32, #tpu.memory_space<vmem>>, %arg5: memref<23x32xf32, #tpu.memory_space<vmem>>, %arg6: memref<16x64xf32, #tpu.memory_space<vmem>>) attributes {dimension_semantics = [#tpu.dimension_semantics<parallel>], iteration_bounds = array<i64: 1>, scalar_prefetch = 0 : i64, scratch_operands = 0 : i64, tpu.core_type = #tpu.core_type<tc>, window_params = [{transform_indices = @transform_0, window_bounds = array<i64: 16, 12>}, {transform_indices = @transform_1, window_bounds = array<i64: 16, 3>}, {transform_indices = @transform_2, window_bounds = array<i64: 16, 32>}, {pipeline_mode = #tpu.pipeline_mode<synchronous>, transform_indices = @transform_3, window_bounds = array<i64: 12, 32>}, {pipeline_mode = #tpu.pipeline_mode<synchronous>, transform_indices = @transform_4, window_bounds = array<i64: 23, 32>}, {transform_indices = @transform_5, window_bounds = array<i64: 16, 64>}]} {
    %c0 = arith.constant 0 : index
    %c0_0 = arith.constant 0 : index
    %0 = vector.load %arg1[%c0, %c0_0] : memref<16x12xf32, #tpu.memory_space<vmem>>, vector<16x12xf32>
    %c0_1 = arith.constant 0 : index
    %c0_2 = arith.constant 0 : index
    %1 = vector.load %arg4[%c0_1, %c0_2] : memref<12x32xf32, #tpu.memory_space<vmem>>, vector<12x32xf32>
    %cst = arith.constant dense<0.000000e+00> : vector<16x32xf32>
    %2 = tpu.matmul %0, %1, %cst {dimension_numbers = #tpu.dot_dimension_numbers<[1], [0], [0], [1], [0, 0, 1, 1], [], []>} : vector<16x12xf32>, vector<12x32xf32>, vector<16x32xf32> -> vector<16x32xf32>
    %c0_3 = arith.constant 0 : index
    %c0_4 = arith.constant 0 : index
    %3 = vector.load %arg3[%c0_3, %c0_4] : memref<16x32xf32, #tpu.memory_space<vmem>>, vector<16x32xf32>
    %4 = arith.addf %2, %3 : vector<16x32xf32>
    %c0_5 = arith.constant 0 : index
    %c0_6 = arith.constant 0 : index
    %5 = vector.load %arg2[%c0_5, %c0_6] : memref<16x3xi32, #tpu.memory_space<vmem>>, vector<16x3xi32>
    %6 = tpu.iota {dimensions = array<i32: 1>} : vector<16x23xi32>
    %7 = vector.extract_strided_slice %5 {offsets = [0, 0], sizes = [16, 1], strides = [1, 1]} : vector<16x3xi32> to vector<16x1xi32>
    %8 = vector.broadcast %7 : vector<16x1xi32> to vector<16x23xi32>
    %9 = arith.cmpi eq, %6, %8 : vector<16x23xi32>
    %10 = arith.extui %9 : vector<16x23xi1> to vector<16x23xi32>
    %11 = arith.sitofp %10 : vector<16x23xi32> to vector<16x23xf32>
    %12 = vector.extract_strided_slice %5 {offsets = [0, 1], sizes = [16, 1], strides = [1, 1]} : vector<16x3xi32> to vector<16x1xi32>
    %13 = vector.broadcast %12 : vector<16x1xi32> to vector<16x23xi32>
    %14 = arith.cmpi eq, %6, %13 : vector<16x23xi32>
    %15 = arith.extui %14 : vector<16x23xi1> to vector<16x23xi32>
    %16 = arith.sitofp %15 : vector<16x23xi32> to vector<16x23xf32>
    %17 = arith.addf %11, %16 : vector<16x23xf32>
    %18 = vector.extract_strided_slice %5 {offsets = [0, 2], sizes = [16, 1], strides = [1, 1]} : vector<16x3xi32> to vector<16x1xi32>
    %19 = vector.broadcast %18 : vector<16x1xi32> to vector<16x23xi32>
    %20 = arith.cmpi eq, %6, %19 : vector<16x23xi32>
    %21 = arith.extui %20 : vector<16x23xi1> to vector<16x23xi32>
    %22 = arith.sitofp %21 : vector<16x23xi32> to vector<16x23xf32>
    %23 = arith.addf %17, %22 : vector<16x23xf32>
    %c0_7 = arith.constant 0 : index
    %c0_8 = arith.constant 0 : index
    %24 = vector.load %arg5[%c0_7, %c0_8] : memref<23x32xf32, #tpu.memory_space<vmem>>, vector<23x32xf32>
    %cst_9 = arith.constant dense<0.000000e+00> : vector<16x32xf32>
    %25 = tpu.matmul %23, %24, %cst_9 {dimension_numbers = #tpu.dot_dimension_numbers<[1], [0], [0], [1], [0, 0, 1, 1], [], []>} : vector<16x23xf32>, vector<23x32xf32>, vector<16x32xf32> -> vector<16x32xf32>
    %26 = tpu.concatenate %4, %25 in 1 : vector<16x32xf32>, vector<16x32xf32> -> vector<16x64xf32>
    %c0_10 = arith.constant 0 : index
    %c0_11 = arith.constant 0 : index
    %27 = vector.load %arg6[%c0_10, %c0_11] : memref<16x64xf32, #tpu.memory_space<vmem>>, vector<16x64xf32>
    tpu.vector_store %arg6[%c0_10, %c0_11], %26 {strides = array<i32>} : memref<16x64xf32, #tpu.memory_space<vmem>>, vector<16x64xf32>,
    return
  }
  func.func @transform_0(%arg0: i32) -> (i32, i32) {
    %c0_i32 = arith.constant 0 : i32
    %c0_i32_0 = arith.constant 0 : i32
    return %arg0, %c0_i32 : i32, i32
  }
  func.func @transform_1(%arg0: i32) -> (i32, i32) {
    %c0_i32 = arith.constant 0 : i32
    %c0_i32_0 = arith.constant 0 : i32
    return %arg0, %c0_i32 : i32, i32
  }
  func.func @transform_2(%arg0: i32) -> (i32, i32) {
    %c0_i32 = arith.constant 0 : i32
    %c0_i32_0 = arith.constant 0 : i32
    return %arg0, %c0_i32 : i32, i32
  }
  func.func @transform_3(%arg0: i32) -> (i32, i32) {
    %c0_i32 = arith.constant 0 : i32
    %c0_i32_0 = arith.constant 0 : i32
    %c0_i32_1 = arith.constant 0 : i32
    return %c0_i32, %c0_i32_0 : i32, i32
  }
  func.func @transform_4(%arg0: i32) -> (i32, i32) {
    %c0_i32 = arith.constant 0 : i32
    %c0_i32_0 = arith.constant 0 : i32
    %c0_i32_1 = arith.constant 0 : i32
    return %c0_i32, %c0_i32_0 : i32, i32
  }
  func.func @transform_5(%arg0: i32) -> (i32, i32) {
    %c0_i32 = arith.constant 0 : i32
    %c0_i32_0 = arith.constant 0 : i32
    return %arg0, %c0_i32 : i32, i32
  }
}

</mosaic_0001>

<bundles_post_ra>
// kernel: tpu_custom_call.1
= control target key start
LH: loop header
LB: loop body
LE: loop exit
PB: predicated region body
PF: predicated region fallthrough
CT: control target
= control target key end

     0   :  { %10 = vsyncpa [#allocation3], 0  ;;  %s602_s0 = inlined_call_operand.hbm [shape: f32[16,12], index: 0, kind: input, shape index: {}]   ;;  %s603_s1 = inlined_call_operand.vmem [shape: s32[16,3], index: 1, kind: input, shape index: {}]   ;;  %s604_s2 = inlined_call_operand.hbm [shape: f32[16,32], index: 2, kind: input, shape index: {}]   ;;  %s605_s3 = inlined_call_operand.hbm [shape: f32[12,32], index: 3, kind: input, shape index: {}]   ;;  %s606_s4 = inlined_call_operand.vmem [shape: f32[23,32], index: 4, kind: input, shape index: {}]   ;;  %s607_s5 = inlined_call_operand.hbm [shape: f32[16,64], index: 5, kind: output, shape index: {}]  }
   0x1   :  { %11 = vsyncpa [#allocation6], 0 }
   0x2   :  { %12 = vsyncpa [#allocation4], 0  ;;  %s478_s18 = smov [#allocation5]   ;;  %s479_s20 = smov [#allocation2]  }
   0x3   :  { %s32_s19 = sshll.u32 %s478_s18, 4  ;;  %s18_s21 = sshll.u32 %s479_s20, 4  ;;  %s33_s19 = int_to_ptr.vmem [resolvable:$true] %s32_s19  ;;  %s520_s21 = int_to_ptr.vmem [resolvable:$true] %s18_s21 }
   0x4   :  { %s384_s24 = scalar_lea.hbm %s604_s2, 256 }
   0x5   :  { %p385_p0 = scmp.ne.s32.totalorder %s604_s2, %s384_s24  ;;  %p388_p1 = scmp.lt.u32.totalorder %s384_s24, %s604_s2 }
   0x7   :  { %p390_p2 = pnand %p388_p1, %p385_p0 }
   0x9   :  { %393 = shalt.err (!%p390_p2)
}
   0xa   :  { %s394_s29 = scalar_lea.vmem %s33_s19, 256  ;;  %p399_p4 = scmp.lt.s32.totalorder %s33_s19, %s33_s19 }
   0xb   :  { %p395_p3 = scmp.ne.s32.totalorder %s33_s19, %s394_s29  ;;  %p400_p5 = scmp.lt.s32.totalorder %s394_s29, %s394_s29 }
   0xd   :  { %p401_p6 = por %p400_p5, %p399_p4 }
   0xf   :  { %p402_p7 = pnand %p401_p6, %p395_p3 }
  0x11   :  { %405 = shalt.err (!%p402_p7)
}
  0x12   :  { %s480_s30 = smov 128   ;;  %s481_s6 = smov 8  }
  0x13   :  { %38 = dma.hbm_to_vmem [thread:$0]  %s604_s2, 256, %s33_s19, [#allocation6], %s480_s30, %s480_s30, %s481_s6  }
  0x14   :  { %s406_s11 = scalar_lea.hbm %s602_s0, 256 }
  0x15   :  { %p407_p8 = scmp.ne.s32.totalorder %s602_s0, %s406_s11  ;;  %p410_p9 = scmp.lt.u32.totalorder %s406_s11, %s602_s0 }
  0x17   :  { %p412_p10 = pnand %p410_p9, %p407_p8 }
  0x19   :  { %415 = shalt.err (!%p412_p10)
}
  0x1a   :  { %s416_s16 = scalar_lea.vmem %s520_s21, 256  ;;  %p421_p12 = scmp.lt.s32.totalorder %s520_s21, %s520_s21 }
  0x1b   :  { %p417_p11 = scmp.ne.s32.totalorder %s520_s21, %s416_s16  ;;  %p422_p13 = scmp.lt.s32.totalorder %s416_s16, %s416_s16 }
  0x1d   :  { %p423_p0 = por %p422_p13, %p421_p12 }
  0x1f   :  { %p424_p1 = pnand %p423_p0, %p417_p11 }
  0x21   :  { %427 = shalt.err (!%p424_p1)
}
  0x22   :  { %24 = dma.hbm_to_vmem [thread:$0]  %s602_s0, 256, %s520_s21, [#allocation3], %s480_s30, %s480_s30, %s481_s6  }
  0x23   :  { %s482_s18 = smov [#allocation7]   ;;  %s428_s23 = scalar_lea.hbm %s605_s3, 256 }
  0x24   :  { %s44_s19 = sshll.u32 %s482_s18, 4  ;;  %p429_p2 = scmp.ne.s32.totalorder %s605_s3, %s428_s23  ;;  %s45_s19 = int_to_ptr.vmem [resolvable:$true] %s44_s19 }
  0x25   :  { %p432_p3 = scmp.lt.u32.totalorder %s428_s23, %s605_s3 }
  0x27   :  { %p434_p4 = pnand %p432_p3, %p429_p2 }
  0x29   :  { %437 = shalt.err (!%p434_p4)
}
  0x2a   :  { %s438_s28 = scalar_lea.vmem %s45_s19, 256  ;;  %p443_p6 = scmp.lt.s32.totalorder %s45_s19, %s45_s19 }
  0x2b   :  { %p439_p5 = scmp.ne.s32.totalorder %s45_s19, %s438_s28  ;;  %p444_p7 = scmp.lt.s32.totalorder %s438_s28, %s438_s28 }
  0x2d   :  { %p445_p8 = por %p444_p7, %p443_p6 }
  0x2f   :  { %p446_p9 = pnand %p445_p8, %p439_p5 }
  0x31   :  { %449 = shalt.err (!%p446_p9)
}
  0x32   :  { %50 = dma.hbm_to_vmem [thread:$0]  %s605_s3, 256, %s45_s19, [#allocation6], %s480_s30, %s480_s30, %s481_s6  }
  0x33   :  { %472 = dma.done.wait [#allocation3], 256  }
  0x34   :  { %473 = vsyncadd [#allocation3], 4294967040 }
  0x35   :  { %474 = dma.done.wait [#allocation6], 512  }
  0x36   :  { %475 = vsyncadd [#allocation6], 4294966784  ;;  %v483_v0 = vmov 0   ;;  %v155_v1 = vld [vmem:[%s603_s1 + $0x8] sm:$0xff]  ;;  %v154_v2 = vld [vmem:[%s603_s1] sm:$0xff]  ;;  %v484_v3 = vmov 1   ;;  %v156_v14 = vlaneseq }
  0x37   :  { %380 = vset.pattern.permute.xlu1 %v483_v0  ;;  %378 = vset.pattern.permute.xlu0 %v483_v0  ;;  %v198_v4 = vld [vmem:[%s606_s4] sm:$0xff]  ;;  %v199_v5 = vld [vmem:[%s606_s4 + $0x8] sm:$0xff]  ;;  %v485_v7 = vmov 2   ;;  %v200_v8 = vld [vmem:[%s606_s4 + $0x10] sm:$0x7f]  ;;  %vm208_vm0 = vcmask 1046528  }
  0x38   :  { %162 = vperm.xlu1 %380, %v155_v1   ;;  %159 = vperm.xlu0 %378, %v154_v2   ;;  %v362_v6 = vpack.c.bf16 %v199_v5, %v198_v4  ;;  %v64_v9 = vld [vmem:[#allocation7] sm:$0xff]  ;;  %v65_v10 = vld [vmem:[#allocation7 + $0x8] sm:$0xf]  ;;  %vm75_vm1 = vcmask 1043456   ;;  %vm486_vm2 = vmmov 1   ;;  %vm68_vm4 = vcmask 97280  }
  0x39   :  { %v62_v11 = vld [vmem:[#allocation2] sm:$0xff]  ;;  %v356_v12 = vpack.c.bf16 %v65_v10, %v64_v9  ;;  %vm357_vm3 = vmpackc.low %vm75_vm1, %vm486_vm2  ;;  %v63_v13 = vld [vmem:[#allocation2 + $0x8] sm:$0xff]  ;;  %v157_v17 = vand.u32 127, %v156_v14  ;;  %v487_v20 = vmov 0.0   ;;  %vm201_vm11 = vcmask 187392   ;;  %s488_s4 = smov 32  }
  0x3a   :  { %363 = vmatprep.subr.bf16.mxu1 %v362_v6  ;;  %344 = vmatprep.mubr.msk.f32.mxu0 %vm68_vm4, %v62_v11  ;;  %v66_v37 = vld [vmem:[#allocation5] sm:$0xff]  ;;  %v67_v39 = vld [vmem:[#allocation5 + $0x8] sm:$0xff]  ;;  %vm295_vm12 = vcmask 261120   ;;  %vm298_vm13 = vcmask 523264   ;;  %s489_s14 = smov [#allocation8]  }
  0x3b   :  { %365 = vmatpush3.bf16.msra.mxu1 %v362_v6  ;;  %358 = vmatprep.subr.msk.bf16.mxu0 %vm357_vm3, %v356_v12  ;;  %s306_s15 = sshll.u32 %s489_s14, 4  ;;  %s307_s15 = int_to_ptr.vmem [resolvable:$true] %s306_s15 }
  0x3c   :  { %381 = vset.pattern.permute.xlu1 %v484_v3  ;;  %379 = vset.pattern.permute.xlu0 %v484_v3  ;;  %s450_s16 = scalar_lea.vmem %s307_s15, 256  ;;  %p455_p11 = scmp.lt.s32.totalorder %s307_s15, %s307_s15 }
  0x3d   :  { %174 = vperm.xlu1 %381, %v155_v1   ;;  %171 = vperm.xlu0 %379, %v154_v2   ;;  %p451_p10 = scmp.ne.s32.totalorder %s307_s15, %s450_s16  ;;  %p456_p12 = scmp.lt.s32.totalorder %s450_s16, %s450_s16 }
  0x3e   :  { %351 = vmatprep.subr.msk.mxu1 %vm208_vm0, %v200_v8  ;;  %361 = vmatpush3.bf16.msk.msra.mxu0 %vm357_vm3, %v356_v12 }
  0x3f   :  { %352 = vmatpush3.msk.msra.mxu1 %vm208_vm0, %v200_v8  ;;  %p457_p13 = por %p456_p12, %p455_p11 }
  0x41   :  { %382 = vset.pattern.permute.xlu1 %v485_v7  ;;  %383 = vset.pattern.permute.xlu0 %v485_v7  ;;  %p458_p0 = pnand %p457_p13, %p451_p10 }
  0x42   :  { %185 = vperm.xlu1 %382, %v154_v2   ;;  %188 = vperm.xlu0 %383, %v155_v1  }
  0x43   :  { %345 = vmatmul.mubr.msk.f32.vlgmr.msra.gmra.mrb[0].mxu0 %vm68_vm4, %v63_v13 }
  0xb7   :  { %v163_v15 = vpop.permute.xlu1 %162  ;;  %v160_v16 = vpop.permute.xlu0 %159 }
  0xb8   :  { %vm165_vm7 = vcmp.eq.s32.totalorder %v157_v17, %v163_v15  ;;  %vm164_vm8 = vcmp.eq.s32.totalorder %v157_v17, %v160_v16 }
  0xb9   :  { %v323_v23 = vsel %vm165_vm7, 1.0, %v487_v20  ;;  %v322_v24 = vsel %vm164_vm8, 1.0, %v487_v20 }
  0xbc   :  { %v175_v18 = vpop.permute.xlu1 %174  ;;  %v172_v19 = vpop.permute.xlu0 %171 }
  0xbd   :  { %vm177_vm5 = vcmp.eq.s32.totalorder %v157_v17, %v175_v18  ;;  %vm176_vm6 = vcmp.eq.s32.totalorder %v157_v17, %v172_v19 }
  0xbe   :  { %v325_v21 = vsel %vm177_vm5, 1.0, %v487_v20  ;;  %v324_v22 = vsel %vm176_vm6, 1.0, %v487_v20 }
  0xbf   :  { %v183_v27 = vadd.f32 %v325_v21, %v323_v23  ;;  %v182_v28 = vadd.f32 %v324_v22, %v322_v24 }
  0xc1   :  { %v186_v25 = vpop.permute.xlu1 %185  ;;  %v189_v26 = vpop.permute.xlu0 %188 }
  0xc2   :  { %vm190_vm9 = vcmp.eq.s32.totalorder %v157_v17, %v186_v25  ;;  %vm191_vm10 = vcmp.eq.s32.totalorder %v157_v17, %v189_v26 }
  0xc3   :  { %v326_v29 = vsel %vm190_vm9, 1.0, %v487_v20  ;;  %v327_v30 = vsel %vm191_vm10, 1.0, %v487_v20 }
  0xc4   :  { %v197_v31 = vadd.f32 %v327_v30, %v183_v27  ;;  %v196_v32 = vadd.f32 %v326_v29, %v182_v28 }
  0xc6   :  { %353 = vmatprep.mubr.msk.f32.mxu1 %vm201_vm11, %v196_v32 }
  0xc7   :  { %354 = vmatmul.mubr.msk.f32.vlgmr.msra.gmra.mrb[0].mxu1 %vm201_vm11, %v197_v31 }
 0x116   :  { %v346_v33 = vpop.f32.mrb[0].mxu0 }
 0x117   :  { %v145_v34 = vpop.f32.mrb[1].mxu0  ;;  %v151_v41 = vadd.f32 %v346_v33, %v67_v39 }
 0x118   :  { %v146_v38 = vadd.f32 %v145_v34, %v66_v37 }
 0x19a   :  { %v355_v35 = vpop.f32.mrb[0].mxu1 }
 0x19b   :  { %v278_v36 = vpop.f32.mrb[1].mxu1 }
 0x19c   :  { %289 = vrot.lane.b32.xlu1 %v278_v36, %s488_s4 }
 0x1a0   :  { %291 = vrot.lane.b32.xlu1 %v355_v35, %s488_s4 }
 0x20e   :  { %v290_v40 = vpop.permute.xlu1 %289 }
 0x20f   :  { %v296_v42 = vsel %vm295_vm12, %v146_v38, %v290_v40 }
 0x210   :  { %299 = vst.msk [vmem:[#allocation8] sm:$0xff] %vm298_vm13, %v296_v42 }
 0x212   :  { %v292_v43 = vpop.permute.xlu1 %291 }
 0x213   :  { %v297_v44 = vsel %vm295_vm12, %v151_v41, %v292_v43 }
 0x214   :  { %300 = vst.msk [vmem:[#allocation8 + $0x8] sm:$0xff] %vm298_vm13, %v297_v44 }
 0x215   :  { %461 = shalt.err (!%p458_p0)
}
 0x216   :  { %s462_s18 = scalar_lea.hbm %s607_s5, 256 }
 0x217   :  { %p463_p1 = scmp.ne.s32.totalorder %s607_s5, %s462_s18  ;;  %p466_p2 = scmp.lt.u32.totalorder %s462_s18, %s607_s5 }
 0x219   :  { %p468_p3 = pnand %p466_p2, %p463_p1 }
 0x21b   :  { %471 = shalt.err (!%p468_p3)
}
 0x21c   :  { %312 = dma.vmem_to_hbm [thread:$0]  %s307_s15, 256, %s607_s5, [#allocation4], %s480_s30, %s480_s30, %s481_s6  }
 0x21d   :  { %476 = dma.done.wait [#allocation4], 256  }
 0x21e   :  { %477 = vsyncadd [#allocation4], 4294967040 }
 0x21f   :  { %316 = vsyncpa [#allocation3], 1 }
 0x220   :  { %317 = vsyncpa [#allocation6], 1 }
 0x221   :  { %318 = vsyncpa [#allocation4], 1 }

</bundles_post_ra>
